<compile_context>
chip_gen: v7x
topology: tpu7x:2x2x1
jax: 0.10.0
libtpu: 0.0.40
codegen_flags: <defaults>
</compile_context>

<pallas_src>
import jax
import jax.numpy as jnp
from jax.experimental import pallas as pl
from jax.experimental.pallas import tpu as pltpu


def _round_up(x, m):
    return ((x + m - 1) // m) * m


def _gated_attn_kernel(x_ref, wab_ref, bab_ref, wc_ref, bc_ref, a_out_ref):
    d = wab_ref.shape[1] // 2          # D
    c = a_out_ref.shape[1]             # n_classes (unpadded)

    # Cast x to the MXU operand dtype in-kernel (no wrapper-side HBM round
    # trip when compute_dtype=bf16); accumulate in f32 on the MXU.
    x = x_ref[...].astype(wab_ref.dtype)

    # Fused gate projection: one (tile_n, L) @ (L, 2D) MXU pass.
    ab = jnp.dot(x, wab_ref[...], preferred_element_type=jnp.float32)
    ab = ab + bab_ref[...]                       # biases kept in f32

    # Activations + gating in the compute dtype (EUP/VPU).
    act = ab.astype(wc_ref.dtype)
    a = jnp.tanh(act[:, :d])                     # attention_a nonlinearity
    b = jax.nn.sigmoid(act[:, d:])               # attention_b nonlinearity
    gated = a * b                                # already in MXU operand dtype

    # attention_c: (tile_n, D) @ (D, C_pad) lane-dense MXU pass, f32 accum.
    A = jnp.dot(gated, wc_ref[...], preferred_element_type=jnp.float32)
    A = A + bc_ref[...]

    # Store only the real n_classes columns (padded columns are all zero).
    a_out_ref[...] = A[:, :c].astype(a_out_ref.dtype)


def attn_net_gated(x, wa_t, ba, wb_t, bb, wc_t, bc, *, tile_n=512,
                   compute_dtype=None, out_dtype=jnp.float32,
                   vmem_limit_bytes=None):
    """Forward pass of Attn_Net_Gated.

    x     : (N, L)
    wa_t  : (L, D)   ba : (D,)     -- attention_a Linear (pre-transposed)
    wb_t  : (L, D)   bb : (D,)     -- attention_b Linear (pre-transposed)
    wc_t  : (D, C)   bc : (C,)     -- attention_c Linear (pre-transposed)

    Returns (A, x) with A of shape (N, C) in `out_dtype` (default float32).
    `compute_dtype=jnp.bfloat16` runs the MXU/EUP work in bf16 (f32 accum).
    """
    N, L = x.shape
    D = wa_t.shape[1]
    C = wc_t.shape[1]

    w_dtype = x.dtype if compute_dtype is None else compute_dtype

    # Fuse the two gate weight matrices: (L, 2D); biases stay f32 (added after
    # the f32 accumulation, essentially free on the VPU).
    wab = jnp.concatenate([wa_t, wb_t], axis=1).astype(w_dtype)
    bab = jnp.concatenate([ba, bb]).astype(jnp.float32).reshape(1, 2 * D)

    # Lane-dense RHS for the second matmul: pad n_classes up to 128 columns.
    C_pad = _round_up(C, 128)
    wc_pad = jnp.pad(wc_t.astype(w_dtype), ((0, 0), (0, C_pad - C)))
    bc_pad = jnp.pad(bc.astype(jnp.float32).reshape(1, C),
                     ((0, 0), (0, C_pad - C)))

    # Row tiling without any padding copy of x:
    #  * if N < tile: shrink the block to exactly N (block == full dim is legal
    #    regardless of 8-alignment);
    #  * otherwise use an 8-aligned tile and let Pallas mask the trailing
    #    partial block (reads padded, writes dropped; no cross-row mixing).
    tile_n = max(8, _round_up(min(tile_n, N), 8))
    if tile_n > N:
        tile_n = N
    grid = (pl.cdiv(N, tile_n),)

    A = pl.pallas_call(
        _gated_attn_kernel,
        out_shape=jax.ShapeDtypeStruct((N, C), out_dtype),
        grid_spec=pltpu.PrefetchScalarGridSpec(
            num_scalar_prefetch=0,
            grid=grid,
            in_specs=[
                pl.BlockSpec((tile_n, L), lambda i: (i, 0)),   # x tile (pipelined)
                pl.BlockSpec((L, 2 * D), lambda i: (0, 0)),    # [Wa^T | Wb^T] resident
                pl.BlockSpec((1, 2 * D), lambda i: (0, 0)),    # [ba | bb]     resident
                pl.BlockSpec((D, C_pad), lambda i: (0, 0)),    # Wc^T padded   resident
                pl.BlockSpec((1, C_pad), lambda i: (0, 0)),    # bc  padded    resident
            ],
            out_specs=pl.BlockSpec((tile_n, C), lambda i: (i, 0)),
        ),
        compiler_params=pltpu.CompilerParams(
            dimension_semantics=("parallel",),
            vmem_limit_bytes=vmem_limit_bytes,
        ),
    )(x, wab, bab, wc_pad, bc_pad)

    # The PyTorch forward returns the untouched input as the second output.
    return A, x


def _reference(x, wa_t, ba, wb_t, bb, wc_t, bc):
    a = jnp.tanh(x @ wa_t + ba)
    b = jax.nn.sigmoid(x @ wb_t + bb)
    A = (a * b) @ wc_t + bc
    return A, x


if __name__ == "__main__":
    # Small TPU-layout-friendly shapes consistent with the module
    # (L=1024, D=256, n_classes=1 scaled down).  N deliberately NOT a multiple
    # of the tile so the masked partial trailing block is exercised.
    N, L, D, C = 200, 256, 128, 1

    key = jax.random.PRNGKey(0)
    kx, kwa, kba, kwb, kbb, kwc, kbc = jax.random.split(key, 7)

    x = jax.random.normal(kx, (N, L), dtype=jnp.float32)

    # Deterministic parameter init (uniform, like torch Linear 1/sqrt(fan_in)).
    lim_l = 1.0 / jnp.sqrt(jnp.float32(L))
    lim_d = 1.0 / jnp.sqrt(jnp.float32(D))
    wa_t = jax.random.uniform(kwa, (L, D), jnp.float32, -lim_l, lim_l)
    ba = jax.random.uniform(kba, (D,), jnp.float32, -lim_l, lim_l)
    wb_t = jax.random.uniform(kwb, (L, D), jnp.float32, -lim_l, lim_l)
    bb = jax.random.uniform(kbb, (D,), jnp.float32, -lim_l, lim_l)
    wc_t = jax.random.uniform(kwc, (D, C), jnp.float32, -lim_d, lim_d)
    bc = jax.random.uniform(kbc, (C,), jnp.float32, -lim_d, lim_d)

    A_ref, _ = _reference(x, wa_t, ba, wb_t, bb, wc_t, bc)

    # f32 path, multi-step grid with a partial last block (200 = 3*64 + 8).
    A, x_out = attn_net_gated(x, wa_t, ba, wb_t, bb, wc_t, bc, tile_n=64)
    A = jax.block_until_ready(A)
    assert A.shape == (N, C) and x_out.shape == (N, L)
    assert jnp.allclose(A, A_ref, atol=1e-4, rtol=1e-4)
    assert x_out is x  # pure pass-through, no copy

    # f32 path, single full-extent block (tile shrunk to N).
    A1, _ = attn_net_gated(x, wa_t, ba, wb_t, bb, wc_t, bc)
    A1 = jax.block_until_ready(A1)
    assert jnp.allclose(A1, A_ref, atol=1e-4, rtol=1e-4)

    # bf16 MXU/EUP path (f32 accumulation, f32 output) vs f32 reference.
    A_bf16, _ = attn_net_gated(x, wa_t, ba, wb_t, bb, wc_t, bc, tile_n=64,
                               compute_dtype=jnp.bfloat16)
    A_bf16 = jax.block_until_ready(A_bf16)
    assert A_bf16.dtype == jnp.float32
    assert jnp.allclose(A_bf16, A_ref, atol=1e-1, rtol=1e-1)

    print("KERNEL_OK")
</pallas_src>

<mosaic_0001>
module attributes {stable_mosaic.version = 11 : i64} {
  func.func @_gated_attn_kernel(%arg0: i32, %arg1: memref<64x256xf32, #tpu.memory_space<vmem>>, %arg2: memref<256x256xf32, #tpu.memory_space<vmem>>, %arg3: memref<1x256xf32, #tpu.memory_space<vmem>>, %arg4: memref<128x128xf32, #tpu.memory_space<vmem>>, %arg5: memref<1x128xf32, #tpu.memory_space<vmem>>, %arg6: memref<64x1xf32, #tpu.memory_space<vmem>>) attributes {dimension_semantics = [#tpu.dimension_semantics<parallel>], iteration_bounds = array<i64: 4>, scalar_prefetch = 0 : i64, scratch_operands = 0 : i64, tpu.core_type = #tpu.core_type<tc>, window_params = [{transform_indices = @transform_0, window_bounds = array<i64: 64, 256>}, {pipeline_mode = #tpu.pipeline_mode<synchronous>, transform_indices = @transform_1, window_bounds = array<i64: 256, 256>}, {pipeline_mode = #tpu.pipeline_mode<synchronous>, transform_indices = @transform_2, window_bounds = array<i64: 1, 256>}, {pipeline_mode = #tpu.pipeline_mode<synchronous>, transform_indices = @transform_3, window_bounds = array<i64: 128, 128>}, {pipeline_mode = #tpu.pipeline_mode<synchronous>, transform_indices = @transform_4, window_bounds = array<i64: 1, 128>}, {transform_indices = @transform_5, window_bounds = array<i64: 64, 1>}]} {
    %c0 = arith.constant 0 : index
    %c0_0 = arith.constant 0 : index
    %0 = vector.load %arg1[%c0, %c0_0] : memref<64x256xf32, #tpu.memory_space<vmem>>, vector<64x256xf32>
    %c0_1 = arith.constant 0 : index
    %c0_2 = arith.constant 0 : index
    %1 = vector.load %arg2[%c0_1, %c0_2] : memref<256x256xf32, #tpu.memory_space<vmem>>, vector<256x256xf32>
    %cst = arith.constant dense<0.000000e+00> : vector<64x256xf32>
    %2 = tpu.matmul %0, %1, %cst {dimension_numbers = #tpu.dot_dimension_numbers<[1], [0], [0], [1], [0, 0, 1, 1], [], []>} : vector<64x256xf32>, vector<256x256xf32>, vector<64x256xf32> -> vector<64x256xf32>
    %c0_3 = arith.constant 0 : index
    %c0_4 = arith.constant 0 : index
    %3 = vector.load %arg3[%c0_3, %c0_4] : memref<1x256xf32, #tpu.memory_space<vmem>>, vector<1x256xf32>
    %4 = vector.broadcast %3 : vector<1x256xf32> to vector<64x256xf32>
    %5 = arith.addf %2, %4 : vector<64x256xf32>
    %6 = vector.extract_strided_slice %5 {offsets = [0, 0], sizes = [64, 128], strides = [1, 1]} : vector<64x256xf32> to vector<64x128xf32>
    %7 = math.tanh %6 : vector<64x128xf32>
    %8 = vector.extract_strided_slice %5 {offsets = [0, 128], sizes = [64, 128], strides = [1, 1]} : vector<64x256xf32> to vector<64x128xf32>
    %9 = arith.negf %8 : vector<64x128xf32>
    %10 = math.exp %9 : vector<64x128xf32>
    %cst_5 = arith.constant 1.000000e+00 : f32
    %11 = vector.broadcast %cst_5 : f32 to vector<64x128xf32>
    %12 = arith.addf %11, %10 : vector<64x128xf32>
    %13 = arith.divf %11, %12 : vector<64x128xf32>
    %14 = arith.mulf %7, %13 : vector<64x128xf32>
    %c0_6 = arith.constant 0 : index
    %c0_7 = arith.constant 0 : index
    %15 = vector.load %arg4[%c0_6, %c0_7] : memref<128x128xf32, #tpu.memory_space<vmem>>, vector<128x128xf32>
    %cst_8 = arith.constant dense<0.000000e+00> : vector<64x128xf32>
    %16 = tpu.matmul %14, %15, %cst_8 {dimension_numbers = #tpu.dot_dimension_numbers<[1], [0], [0], [1], [0, 0, 1, 1], [], []>} : vector<64x128xf32>, vector<128x128xf32>, vector<64x128xf32> -> vector<64x128xf32>
    %c0_9 = arith.constant 0 : index
    %c0_10 = arith.constant 0 : index
    %17 = vector.load %arg5[%c0_9, %c0_10] : memref<1x128xf32, #tpu.memory_space<vmem>>, vector<1x128xf32>
    %18 = vector.broadcast %17 : vector<1x128xf32> to vector<64x128xf32>
    %19 = arith.addf %16, %18 : vector<64x128xf32>
    %20 = vector.extract_strided_slice %19 {offsets = [0, 0], sizes = [64, 1], strides = [1, 1]} : vector<64x128xf32> to vector<64x1xf32>
    %c0_11 = arith.constant 0 : index
    %c0_12 = arith.constant 0 : index
    %21 = vector.load %arg6[%c0_11, %c0_12] : memref<64x1xf32, #tpu.memory_space<vmem>>, vector<64x1xf32>
    tpu.vector_store %arg6[%c0_11, %c0_12], %20 {strides = array<i32>} : memref<64x1xf32, #tpu.memory_space<vmem>>, vector<64x1xf32>,
    return
  }
  func.func @transform_0(%arg0: i32) -> (i32, i32) {
    %c0_i32 = arith.constant 0 : i32
    %c0_i32_0 = arith.constant 0 : i32
    return %arg0, %c0_i32 : i32, i32
  }
  func.func @transform_1(%arg0: i32) -> (i32, i32) {
    %c0_i32 = arith.constant 0 : i32
    %c0_i32_0 = arith.constant 0 : i32
    %c0_i32_1 = arith.constant 0 : i32
    return %c0_i32, %c0_i32_0 : i32, i32
  }
  func.func @transform_2(%arg0: i32) -> (i32, i32) {
    %c0_i32 = arith.constant 0 : i32
    %c0_i32_0 = arith.constant 0 : i32
    %c0_i32_1 = arith.constant 0 : i32
    return %c0_i32, %c0_i32_0 : i32, i32
  }
  func.func @transform_3(%arg0: i32) -> (i32, i32) {
    %c0_i32 = arith.constant 0 : i32
    %c0_i32_0 = arith.constant 0 : i32
    %c0_i32_1 = arith.constant 0 : i32
    return %c0_i32, %c0_i32_0 : i32, i32
  }
  func.func @transform_4(%arg0: i32) -> (i32, i32) {
    %c0_i32 = arith.constant 0 : i32
    %c0_i32_0 = arith.constant 0 : i32
    %c0_i32_1 = arith.constant 0 : i32
    return %c0_i32, %c0_i32_0 : i32, i32
  }
  func.func @transform_5(%arg0: i32) -> (i32, i32) {
    %c0_i32 = arith.constant 0 : i32
    %c0_i32_0 = arith.constant 0 : i32
    return %arg0, %c0_i32 : i32, i32
  }
}

</mosaic_0001>

<bundles_post_ra>
// kernel: tpu_custom_call.1
= control target key start
LH: loop header
LB: loop body
LE: loop exit
PB: predicated region body
PF: predicated region fallthrough
CT: control target
= control target key end

     0   :  { %10 = vsyncpa [#allocation3], 0  ;;  %s1870_s0 = inlined_call_operand.hbm [shape: f32[200,256], index: 0, kind: input, shape index: {}]   ;;  %s1871_s1 = inlined_call_operand.hbm [shape: f32[256,256], index: 1, kind: input, shape index: {}]   ;;  %s1872_s2 = inlined_call_operand.vmem [shape: f32[1,256], index: 2, kind: input, shape index: {}]   ;;  %s1873_s3 = inlined_call_operand.hbm [shape: f32[128,128], index: 3, kind: input, shape index: {}]   ;;  %s1874_s4 = inlined_call_operand.vmem [shape: f32[1,128], index: 4, kind: input, shape index: {}]   ;;  %s1875_s5 = inlined_call_operand.vmem [shape: f32[200,1], index: 5, kind: output, shape index: {}]  }
   0x1   :  { %12 = vsyncpa [#allocation3 + $0x1], 0 }
   0x2   :  { %13 = vsyncpa [#allocation5], 0  ;;  %s1580_s18 = smov 0   ;;  %s1582_s19 = smov 0  }
   0x3   :  { %s1584_s20 = smov 0   ;;  %s1586_s21 = smov 0  }
   0x4 LB: > { %s1599_s22 = sadd.s32 4294967295, %s1507_s21   ;;  %s1602_s23 = sadd.s32 1, %s1507_s21   ;;  %s1507_s21 = sphi %s1586_s21, %s1896_s21   ;;  %s1503_s20 = sphi %s1584_s20, %s1895_s20   ;;  %s1499_s19 = sphi %s1582_s19, %s1894_s19   ;;  %s1495_s18 = sphi %s1580_s18, %s1893_s18  }
   0x5   : > { %s23_s24 = ssub.s32 %s1507_s21, %s1602_s23  ;;  %s26_s25 = sadd.s32 1, %s1503_s20 }
   0x6   : > { %p24_p0 = scmp.eq.s32.totalorder %s23_s24, 0  ;;  %p33_p1 = scmp.ne.s32.totalorder %s1503_s20, %s1499_s19 }
   0x7   : > { %p34_p2 = scmp.eq.s32.totalorder %s1507_s21, 0  ;;  %p39_p3 = scmp.ne.s32.totalorder %s1499_s19, %s1495_s18 }
   0x8   : > { %s1612_s26 = scalar_select %p24_p0, %s1503_s20, %s26_s25  }
   0x9   : > { %p1614_p4 = por %p34_p2, %p33_p1  ;;  %p1876_p5 = scmp.eq.s32.totalorder %s1599_s22, 0 }
   0xa   : > { %p147_p6 = scmp.eq.s32.totalorder %s1599_s22, 3  ;;  %p967_p7 = scmp.ge.s32.totalorder %s1507_s21, 1 }
   0xb   : > { %s1879_s27 = scalar_select %p1614_p4, 1, 0 }
   0xc   : > { %p1623_p8 = por %p1876_p5, %p39_p3  ;;  %p160_p9 = scmp.lt.s32.totalorder %s1507_s21, 5 }
   0xd   : > { %p1628_p10 = por %p147_p6, %p33_p1  ;;  %s1541_s6 = smov [#allocation4]  }
   0xe   : > { %s1880_s28 = scalar_select %p1623_p8, 1, 0 }
   0xf   : > { %s1881_s29 = scalar_select %p1628_p10, 1, 0 }
  0x10   : > { %p1632_p11 = pnand %p967_p7, %p160_p9  ;;  %s172_s7 = sshll.u32 %s1541_s6, 4  ;;  %s173_s7 = int_to_ptr.vmem [resolvable:$true] %s172_s7 }
  0x11   : > { %s1542_s9 = smov [#allocation6]   ;;  %s1353_s13 = scalar_lea.hbm %s1871_s1, 8192 }
  0x12   : > { %s1882_s30 = scalar_select %p1632_p11, 1, 0 }
  0x13   : > { %p1190_p12 = pneg %p1632_p11  ;;  %s188_s10 = sshll.u32 %s1542_s9, 4  ;;  %s1644_s10 = int_to_ptr.vmem [resolvable:$true] %s188_s10 }
  0x14   : > { %p1354_p0 = scmp.ne.s32.totalorder %s1871_s1, %s1353_s13  ;;  %p1360_p6 = scmp.lt.u32.totalorder %s1353_s13, %s1871_s1 }
  0x15   : > { %p1640_p13 = pnand %p1190_p12, %p1876_p5 }
  0x17   : > { %p1355_p1 = pneg %p1640_p13 }
  0x19   : > { %p1356_p2 = pnand %p1355_p1, %p1354_p0 }
  0x1b   : > { %p1357_p3 = pneg %p1356_p2 }
  0x1d   : > { %p1362_p7 = pnand %p1360_p6, %p1357_p3 }
  0x1f   : > { %1365 = shalt.err (!%p1362_p7)
}
  0x20   : > { %s1366_s18 = scalar_lea.vmem %s173_s7, 8192  ;;  %p1374_p10 = scmp.lt.s32.totalorder %s173_s7, %s173_s7 }
  0x21   : > { %p1367_p9 = scmp.ne.s32.totalorder %s173_s7, %s1366_s18  ;;  %p1375_p8 = scmp.lt.s32.totalorder %s1366_s18, %s1366_s18 }
  0x23   : > { %p1369_p12 = pnand %p1367_p9, %p1355_p1  ;;  %p1376_p11 = por %p1375_p8, %p1374_p10 }
  0x25   : > { %p1370_p5 = pneg %p1369_p12 }
  0x27   : > { %p1377_p4 = pnand %p1376_p11, %p1370_p5 }
  0x29   : > { %1380 = shalt.err (!%p1377_p4)
}
  0x2a   : > { %s1543_s24 = smov 256   ;;  %s1544_s25 = smov 16  }
  0x2b   : > { %1193 = dma.hbm_to_vmem [thread:$0]  (!%p1640_p13), %s1871_s1, 8192, %s173_s7, [#allocation5], %s1543_s24, %s1543_s24, %s1544_s25  }
  0x2c   : > { %s1381_s13 = scalar_lea.hbm %s1873_s3, 2048 }
  0x2d   : > { %p1382_p0 = scmp.ne.s32.totalorder %s1873_s3, %s1381_s13  ;;  %p1388_p8 = scmp.lt.u32.totalorder %s1381_s13, %s1873_s3 }
  0x2f   : > { %p1384_p4 = pnand %p1382_p0, %p1355_p1 }
  0x31   : > { %p1385_p5 = pneg %p1384_p4 }
  0x33   : > { %p1390_p10 = pnand %p1388_p8, %p1385_p5 }
  0x35   : > { %1393 = shalt.err (!%p1390_p10)
}
  0x36   : > { %s1394_s7 = scalar_lea.vmem %s1644_s10, 2048  ;;  %p1402_p6 = scmp.lt.s32.totalorder %s1644_s10, %s1644_s10 }
  0x37   : > { %p1395_p11 = scmp.ne.s32.totalorder %s1644_s10, %s1394_s7  ;;  %p1403_p7 = scmp.lt.s32.totalorder %s1394_s7, %s1394_s7 }
  0x39   : > { %p1397_p2 = pnand %p1395_p11, %p1355_p1  ;;  %p1404_p9 = por %p1403_p7, %p1402_p6 }
  0x3b   : > { %p1398_p3 = pneg %p1397_p2 }
  0x3d   : > { %p1405_p12 = pnand %p1404_p9, %p1398_p3 }
  0x3f   : > { %1408 = shalt.err (!%p1405_p12)
}
  0x40   : > { %s1545_s18 = smov 128   ;;  %s1546_s24 = smov 8  }
  0x41   : > { %1196 = dma.hbm_to_vmem [thread:$0]  (!%p1640_p13), %s1873_s3, 2048, %s1644_s10, [#allocation5], %s1545_s18, %s1545_s18, %s1546_s24  }
  0x42   : > { %p970_p0 = scmp.ge.s32.totalorder %s1507_s21, 4 }
  0x43   : > { %p1884_p1 = scmp.ne.s32.totalorder (!%p970_p0), %s1879_s27, 0 }
  0x44   : > { %201 = sbr.rel (%p970_p0) target bundleno = 110 (0x6e), region = 32 }
  0x4b   : > { %204 = sbr.rel (!%p1884_p1) target bundleno = 110 (0x6e), region = 36  ;;  %s205_s9 = sand.u32 (%p1884_p1), 1, %s1503_s20  }
  0x4c   : > { %s972_s11 = sshll.u32 (%p1884_p1), %s1507_s21, 3  ;;  %s971_s12 = sshll.u32 (%p1884_p1), %s205_s9, 7 }
  0x4d   : > { %s211_s13 = ssub.s32 (%p1884_p1), 25, %s972_s11  ;;  %s1701_s15 = scalar_lea.sflag (%p1884_p1), [#allocation3], %s205_s9 }
  0x4e   : > { %p212_p4 = scmp.lt.s32.totalorder (%p1884_p1), %s211_s13, 8  ;;  %s209_s10 = scalar_lea.vmem (%p1884_p1), [#allocation2], %s971_s12 }
  0x52   : > { %s1898_s13 = smov (!%p212_p4, %s211_s13), 8 }
  0x53   : > { %s1698_s14 = sshll.u32 %s1898_s13, 8 }
  0x54   : > { %s217_s8 = ssub.s32 2048, %s1698_s14 }
  0x55   : > { %218 = vsyncadd %s1701_s15, %s217_s8  ;;  %p975_p13 = scmp.ne.s32.totalorder %s1698_s14, 0  ;;  %s1013_s27 = sshll.u32 %s1507_s21, 11 }
  0x56   : > { %s1709_s7 = scalar_lea.hbm %s1870_s0, %s1013_s27  ;;  %s224_s18 = sshll.u32 %s209_s10, 4  ;;  %s1711_s18 = int_to_ptr.vmem [resolvable:$true] %s224_s18 }
  0x57   : > { %s1409_s24 = scalar_lea.hbm %s1709_s7, %s1698_s14  ;;  %s1413_s21 = scalar_lea.hbm %s1870_s0, 6400 }
  0x58   : > { %p1410_p5 = scmp.ne.s32.totalorder %s1709_s7, %s1409_s24  ;;  %p1414_p11 = scmp.lt.u32.totalorder %s1709_s7, %s1870_s0 }
  0x59   : > { %p1415_p2 = scmp.lt.u32.totalorder %s1413_s21, %s1409_s24  ;;  %p1417_p6 = scmp.lt.u32.totalorder %s1409_s24, %s1709_s7 }
  0x5a   : > { %p1411_p8 = pnand %p1410_p5, %p975_p13 }
  0x5b   : > { %p1416_p3 = por %p1415_p2, %p1414_p11 }
  0x5c   : > { %p1412_p10 = pneg %p1411_p8 }
  0x5d   : > { %p1418_p7 = por %p1417_p6, %p1416_p3 }
  0x5f   : > { %p1419_p9 = pnand %p1418_p7, %p1412_p10 }
  0x61   : > { %1422 = shalt.err (!%p1419_p9)
}
  0x62   : > { %s1423_s12 = scalar_lea.vmem %s1711_s18, %s1698_s14  ;;  %s1547_s13 = smov [#allocation2]  }
  0x63   : > { %p1424_p12 = scmp.ne.s32.totalorder %s1711_s18, %s1423_s12  ;;  %s1427_s8 = sshll.u32 %s1547_s13, 4  ;;  %s1428_s8 = int_to_ptr.vmem [resolvable:$false] %s1427_s8 }
  0x64   : > { %s1429_s10 = scalar_lea.vmem %s1428_s8, 4096  ;;  %p1430_p4 = scmp.lt.s32.totalorder %s1711_s18, %s1428_s8 }
  0x65   : > { %p1425_p0 = pnand %p1424_p12, %p975_p13  ;;  %p1431_p5 = scmp.lt.s32.totalorder %s1429_s10, %s1423_s12 }
  0x67   : > { %p1426_p1 = pneg %p1425_p0  ;;  %p1432_p8 = por %p1431_p5, %p1430_p4 }
  0x69   : > { %p1433_p11 = pnand %p1432_p8, %p1426_p1 }
  0x6b   : > { %1436 = shalt.err (!%p1433_p11)
}
  0x6c   : > { %s1548_s27 = smov 256   ;;  %s1549_s16 = smov 16  }
  0x6d   : > { %230 = dma.hbm_to_vmem [thread:$0]  (%p975_p13), %s1709_s7, %s1698_s14, %s1711_s18, %s1701_s15, %s1548_s27, %s1548_s27, %s1549_s16  }
  0x6e PF: > { %p1885_p10 = scmp.ne.s32.totalorder %s1882_s30, 0 }
  0x6f   : > { %s1741_s17 = sand.u32 (!%p1885_p10), 1, %s1499_s19   ;;  %p1886_p2 = scmp.ne.s32.totalorder (!%p1885_p10), %s1880_s28, 0 }
  0x70   : > { %236 = sbr.rel (%p1885_p10) target bundleno = 726 (0x2d6), region = 40  ;;  %s981_s24 = sshll.u32 (!%p1885_p10), %s1741_s17, 7 }
  0x71   : > { %s239_s25 = scalar_lea.sflag (!%p1885_p10), [#allocation3], %s1741_s17  ;;  %s1745_s6 = scalar_lea.vmem (!%p1885_p10), [#allocation2], %s981_s24 }
  0x77   : > { %1486 = dma.done.wait (%p1886_p2), %s239_s25, 2048  }
  0x78   : > { %1488 = vsyncadd (%p1886_p2), %s239_s25, 4294965248  ;;  %p1887_p13 = scmp.eq.s32.totalorder %s1599_s22, 0 }
  0x7a   : > { %1490 = dma.done.wait (%p1887_p13), [#allocation5], 10240   ;;  %p1888_p3 = pmov %p1887_p13 }
  0x7b   : > { %v304_v0 = vld [vmem:[#allocation4 + $0x8] sm:$0xff]  ;;  %v306_v1 = vld [vmem:[#allocation4 + $0x18] sm:$0xff]  ;;  %v303_v2 = vld [vmem:[#allocation4] sm:$0xff]  ;;  %s984_s14 = sshll.u32 %s1741_s17, 6  ;;  %vm684_vm0 = vcmask 7168   ;;  %p1889_p6 = scmp.ne.s32.totalorder %s1881_s29, 0 }
  0x7c   : > { %1492 = vsyncadd (%p1888_p3), [#allocation5], 4294957056  ;;  %v1085_v3 = vpack.c.bf16 %v306_v1, %v304_v0  ;;  %v305_v4 = vld [vmem:[#allocation4 + $0x10] sm:$0xff]  ;;  %v308_v5 = vld [vmem:[#allocation4 + $0x28] sm:$0xff]  ;;  %s1788_s18 = scalar_lea.vmem [#allocation7], %s984_s14   ;;  %s995_s21 = sshll.u32 (%p1889_p6), %s1599_s22, 3 }
  0x7d   : > { %v310_v6 = vld [vmem:[#allocation4 + $0x38] sm:$0xff]  ;;  %v1087_v7 = vpack.c.bf16 %v305_v4, %v303_v2  ;;  %v307_v9 = vld [vmem:[#allocation4 + $0x20] sm:$0xff]  ;;  %v309_v10 = vld [vmem:[#allocation4 + $0x30] sm:$0xff]  ;;  %s1014_s9 = sshll.u32 (%p1889_p6), %s1599_s22, 6  ;;  %s701_s11 = ssub.s32 (%p1889_p6), 25, %s995_s21 }
  0x7e   : > { %v1089_v8 = vpack.c.bf16 %v310_v6, %v308_v5  ;;  %v312_v11 = vld [vmem:[#allocation4 + $0x48] sm:$0xff]  ;;  %1086 = vmatprep.subr.bf16.mxu0 %v1085_v3  ;;  %v314_v12 = vld [vmem:[#allocation4 + $0x58] sm:$0xff]  ;;  %v1091_v13 = vpack.c.bf16 %v309_v10, %v307_v9  ;;  %v311_v15 = vld [vmem:[#allocation4 + $0x40] sm:$0xff]  ;;  %s1813_s8 = scalar_lea.vmem (%p1889_p6), %s1875_s5, %s1014_s9   ;;  %p702_p7 = scmp.lt.s32.totalorder (%p1889_p6), %s701_s11, 8 }
  0x7f   : > { %1088 = vmatpush1.bf16.msra.mxu0 %v1087_v7  ;;  %v1093_v14 = vpack.c.bf16 %v314_v12, %v312_v11  ;;  %v313_v16 = vld [vmem:[#allocation4 + $0x50] sm:$0xff]  ;;  %v316_v17 = vld [vmem:[#allocation4 + $0x68] sm:$0xff]  ;;  %v318_v18 = vld [vmem:[#allocation4 + $0x78] sm:$0xff] }
  0x80   : > { %1090 = vmatprep.subr.bf16.mxu0 %v1089_v8  ;;  %v1095_v19 = vpack.c.bf16 %v313_v16, %v311_v15  ;;  %v1097_v20 = vpack.c.bf16 %v318_v18, %v316_v17  ;;  %v315_v21 = vld [vmem:[#allocation4 + $0x60] sm:$0xff]  ;;  %v317_v22 = vld [vmem:[#allocation4 + $0x70] sm:$0xff]  ;;  %v320_v23 = vld [vmem:[#allocation4 + $0x88] sm:$0xff] }
  0x81   : > { %v322_v24 = vld [vmem:[#allocation4 + $0x98] sm:$0xff]  ;;  %v1099_v25 = vpack.c.bf16 %v317_v22, %v315_v21  ;;  %v319_v27 = vld [vmem:[#allocation4 + $0x80] sm:$0xff]  ;;  %v321_v28 = vld [vmem:[#allocation4 + $0x90] sm:$0xff] }
  0x82   : > { %v1101_v26 = vpack.c.bf16 %v322_v24, %v320_v23  ;;  %v324_v29 = vld [vmem:[#allocation4 + $0xa8] sm:$0xff]  ;;  %v326_v30 = vld [vmem:[#allocation4 + $0xb8] sm:$0xff]  ;;  %v1103_v31 = vpack.c.bf16 %v321_v28, %v319_v27  ;;  %v323_v33 = vld [vmem:[#allocation4 + $0xa0] sm:$0xff] }
  0x83   : > { %1092 = vmatpush1.bf16.msra.mxu0 %v1091_v13  ;;  %v1105_v32 = vpack.c.bf16 %v326_v30, %v324_v29  ;;  %v325_v34 = vld [vmem:[#allocation4 + $0xb0] sm:$0xff]  ;;  %v328_v35 = vld [vmem:[#allocation4 + $0xc8] sm:$0xff]  ;;  %v330_v36 = vld [vmem:[#allocation4 + $0xd8] sm:$0xff] }
  0x84   : > { %1094 = vmatprep.subr.bf16.mxu0 %v1093_v14  ;;  %v1107_v37 = vpack.c.bf16 %v325_v34, %v323_v33  ;;  %v1109_v38 = vpack.c.bf16 %v330_v36, %v328_v35  ;;  %v327_v39 = vld [vmem:[#allocation4 + $0xc0] sm:$0xff]  ;;  %v329_v40 = vld [vmem:[#allocation4 + $0xd0] sm:$0xff]  ;;  %v288_v41 = vld [vmem:[%s1745_s6 + $0x8] sm:$0xff] }
  0x85   : > { %v332_v42 = vld [vmem:[#allocation4 + $0xe8] sm:$0xff]  ;;  %v334_v43 = vld [vmem:[#allocation4 + $0xf8] sm:$0xff]  ;;  %443 = vmatprep.mubr.f32.mxu0 %v288_v41  ;;  %v1111_v44 = vpack.c.bf16 %v329_v40, %v327_v39  ;;  %v331_v46 = vld [vmem:[#allocation4 + $0xe0] sm:$0xff] }
  0x86   : > { %v1113_v45 = vpack.c.bf16 %v334_v43, %v332_v42  ;;  %v333_v47 = vld [vmem:[#allocation4 + $0xf0] sm:$0xff]  ;;  %v336_v48 = vld [vmem:[#allocation4 + $0x108] sm:$0xff]  ;;  %v338_v49 = vld [vmem:[#allocation4 + $0x118] sm:$0xff] }
  0x87   : > { %1096 = vmatpush1.bf16.msra.mxu0 %v1095_v19  ;;  %v1115_v50 = vpack.c.bf16 %v333_v47, %v331_v46  ;;  %v1117_v51 = vpack.c.bf16 %v338_v49, %v336_v48  ;;  %v335_v52 = vld [vmem:[#allocation4 + $0x100] sm:$0xff]  ;;  %v337_v53 = vld [vmem:[#allocation4 + $0x110] sm:$0xff]  ;;  %v340_v54 = vld [vmem:[#allocation4 + $0x128] sm:$0xff] }
  0x88   : > { %1098 = vmatprep.subr.bf16.mxu0 %v1097_v20  ;;  %v342_v55 = vld [vmem:[#allocation4 + $0x138] sm:$0xff]  ;;  %v1119_v56 = vpack.c.bf16 %v337_v53, %v335_v52  ;;  %v339_v58 = vld [vmem:[#allocation4 + $0x120] sm:$0xff]  ;;  %v341_v59 = vld [vmem:[#allocation4 + $0x130] sm:$0xff] }
  0x89   : > { %v1121_v57 = vpack.c.bf16 %v342_v55, %v340_v54  ;;  %v344_v60 = vld [vmem:[#allocation4 + $0x148] sm:$0xff]  ;;  %v346_v61 = vld [vmem:[#allocation4 + $0x158] sm:$0xff]  ;;  %v1123_v62 = vpack.c.bf16 %v341_v59, %v339_v58  ;;  %v343_v0 = vld [vmem:[#allocation4 + $0x140] sm:$0xff] }
  0x8a   : > { %v1125_v63 = vpack.c.bf16 %v346_v61, %v344_v60  ;;  %v345_v1 = vld [vmem:[#allocation4 + $0x150] sm:$0xff]  ;;  %v348_v2 = vld [vmem:[#allocation4 + $0x168] sm:$0xff]  ;;  %v350_v3 = vld [vmem:[#allocation4 + $0x178] sm:$0xff] }
  0x8b   : > { %1100 = vmatpush1.bf16.msra.mxu0 %v1099_v25  ;;  %v1127_v4 = vpack.c.bf16 %v345_v1, %v343_v0  ;;  %v1129_v5 = vpack.c.bf16 %v350_v3, %v348_v2  ;;  %v347_v6 = vld [vmem:[#allocation4 + $0x160] sm:$0xff]  ;;  %v349_v7 = vld [vmem:[#allocation4 + $0x170] sm:$0xff]  ;;  %v352_v8 = vld [vmem:[#allocation4 + $0x188] sm:$0xff] }
  0x8c   : > { %1102 = vmatprep.subr.bf16.mxu0 %v1101_v26  ;;  %v354_v9 = vld [vmem:[#allocation4 + $0x198] sm:$0xff]  ;;  %v1131_v10 = vpack.c.bf16 %v349_v7, %v347_v6  ;;  %v351_v12 = vld [vmem:[#allocation4 + $0x180] sm:$0xff]  ;;  %v353_v13 = vld [vmem:[#allocation4 + $0x190] sm:$0xff] }
  0x8d   : > { %v1133_v11 = vpack.c.bf16 %v354_v9, %v352_v8  ;;  %v356_v14 = vld [vmem:[#allocation4 + $0x1a8] sm:$0xff]  ;;  %v358_v15 = vld [vmem:[#allocation4 + $0x1b8] sm:$0xff]  ;;  %v1135_v16 = vpack.c.bf16 %v353_v13, %v351_v12  ;;  %v355_v18 = vld [vmem:[#allocation4 + $0x1a0] sm:$0xff]  ;;  %v369_v8 = vlaneseq }
  0x8e   : > { %v1137_v17 = vpack.c.bf16 %v358_v15, %v356_v14  ;;  %v357_v19 = vld [vmem:[#allocation4 + $0x1b0] sm:$0xff]  ;;  %v360_v20 = vld [vmem:[#allocation4 + $0x1c8] sm:$0xff]  ;;  %v362_v21 = vld [vmem:[#allocation4 + $0x1d8] sm:$0xff] }
  0x8f   : > { %1104 = vmatpush1.bf16.msra.mxu0 %v1103_v31  ;;  %v1139_v22 = vpack.c.bf16 %v357_v19, %v355_v18  ;;  %v1141_v23 = vpack.c.bf16 %v362_v21, %v360_v20  ;;  %v359_v24 = vld [vmem:[#allocation4 + $0x1c0] sm:$0xff]  ;;  %v361_v25 = vld [vmem:[#allocation4 + $0x1d0] sm:$0xff]  ;;  %v364_v26 = vld [vmem:[#allocation4 + $0x1e8] sm:$0xff]  ;;  %v370_v9 = vshrl.u32 %v369_v8, 7 }
  0x90   : > { %1106 = vmatprep.subr.bf16.mxu0 %v1105_v32  ;;  %v366_v27 = vld [vmem:[#allocation4 + $0x1f8] sm:$0xff]  ;;  %v1143_v28 = vpack.c.bf16 %v361_v25, %v359_v24  ;;  %v363_v30 = vld [vmem:[#allocation4 + $0x1e0] sm:$0xff]  ;;  %v365_v31 = vld [vmem:[#allocation4 + $0x1f0] sm:$0xff] }
  0x91   : > { %v1145_v29 = vpack.c.bf16 %v366_v27, %v364_v26  ;;  %v1147_v32 = vpack.c.bf16 %v365_v31, %v363_v30  ;;  %v287_v33 = vld [vmem:[%s1745_s6] sm:$0xff]  ;;  %v290_v34 = vld [vmem:[%s1745_s6 + $0x18] sm:$0xff]  ;;  %v289_v35 = vld [vmem:[%s1745_s6 + $0x10] sm:$0xff]  ;;  %v371_v18 = vsub.s32 0, %v370_v9 }
  0x92   : > { %v292_v36 = vld [vmem:[%s1745_s6 + $0x28] sm:$0xff]  ;;  %v293_v39 = vld [vmem:[%s1745_s6 + $0x30] sm:$0xff]  ;;  %v295_v41 = vld [vmem:[%s1745_s6 + $0x40] sm:$0xff] }
  0x93   : > { %1108 = vmatpush1.bf16.msra.mxu0 %v1107_v37  ;;  %v291_v37 = vld [vmem:[%s1745_s6 + $0x20] sm:$0xff]  ;;  %v296_v40 = vld [vmem:[%s1745_s6 + $0x48] sm:$0xff]  ;;  %v298_v42 = vld [vmem:[%s1745_s6 + $0x58] sm:$0xff] }
  0x94   : > { %1110 = vmatprep.subr.bf16.mxu0 %v1109_v38  ;;  %v294_v38 = vld [vmem:[%s1745_s6 + $0x38] sm:$0xff]  ;;  %v297_v43 = vld [vmem:[%s1745_s6 + $0x50] sm:$0xff]  ;;  %v556_v48 = vld [vmem:[#allocation6] sm:$0xff] }
  0x95   : > { %v302_v46 = vld [vmem:[%s1745_s6 + $0x78] sm:$0xff]  ;;  %v301_v47 = vld [vmem:[%s1745_s6 + $0x70] sm:$0xff]  ;;  %v557_v49 = vld [vmem:[#allocation6 + $0x8] sm:$0xff] }
  0x96   : > { %v559_v52 = vld [vmem:[#allocation6 + $0x18] sm:$0xff]  ;;  %v560_v54 = vld [vmem:[#allocation6 + $0x20] sm:$0xff]  ;;  %v561_v55 = vld [vmem:[#allocation6 + $0x28] sm:$0xff] }
  0x97   : > { %1112 = vmatpush1.bf16.msra.mxu0 %v1111_v44  ;;  %v300_v44 = vld [vmem:[%s1745_s6 + $0x68] sm:$0xff]  ;;  %v563_v58 = vld [vmem:[#allocation6 + $0x38] sm:$0xff]  ;;  %v564_v60 = vld [vmem:[#allocation6 + $0x40] sm:$0xff] }
  0x98   : > { %1114 = vmatprep.subr.bf16.mxu0 %v1113_v45  ;;  %v299_v45 = vld [vmem:[%s1745_s6 + $0x60] sm:$0xff]  ;;  %v565_v61 = vld [vmem:[#allocation6 + $0x48] sm:$0xff]  ;;  %v567_v0 = vld [vmem:[#allocation6 + $0x58] sm:$0xff] }
  0x99   : > { %v568_v2 = vld [vmem:[#allocation6 + $0x60] sm:$0xff]  ;;  %v569_v3 = vld [vmem:[#allocation6 + $0x68] sm:$0xff]  ;;  %v571_v6 = vld [vmem:[#allocation6 + $0x78] sm:$0xff] }
  0x9b   : > { %1116 = vmatpush1.bf16.msra.mxu0 %v1115_v50  ;;  %v1149_v50 = vpack.c.bf16 %v557_v49, %v556_v48 }
  0x9c   : > { %1118 = vmatprep.subr.bf16.mxu0 %v1117_v51  ;;  %v558_v51 = vld [vmem:[#allocation6 + $0x10] sm:$0xff] }
  0x9d   : > { %1150 = vmatprep.subr.bf16.mxu1 %v1149_v50  ;;  %v1153_v53 = vpack.c.bf16 %v559_v52, %v558_v51 }
  0x9e   : > { %1152 = vmatpush3.bf16.msra.mxu1 %v1149_v50 }
  0x9f   : > { %1120 = vmatpush1.bf16.msra.mxu0 %v1119_v56  ;;  %1154 = vmatprep.subr.bf16.mxu1 %v1153_v53  ;;  %v1157_v56 = vpack.c.bf16 %v561_v55, %v560_v54 }
  0xa0   : > { %1122 = vmatprep.subr.bf16.mxu0 %v1121_v57  ;;  %v562_v57 = vld [vmem:[#allocation6 + $0x30] sm:$0xff] }
  0xa1   : > { %v1161_v59 = vpack.c.bf16 %v563_v58, %v562_v57 }
  0xa2   : > { %1156 = vmatpush3.bf16.msra.mxu1 %v1153_v53 }
  0xa3   : > { %1124 = vmatpush1.bf16.msra.mxu0 %v1123_v62  ;;  %1158 = vmatprep.subr.bf16.mxu1 %v1157_v56  ;;  %v1165_v62 = vpack.c.bf16 %v565_v61, %v564_v60 }
  0xa4   : > { %1126 = vmatprep.subr.bf16.mxu0 %v1125_v63  ;;  %v566_v63 = vld [vmem:[#allocation6 + $0x50] sm:$0xff] }
  0xa5   : > { %v1169_v1 = vpack.c.bf16 %v567_v0, %v566_v63 }
  0xa6   : > { %1160 = vmatpush3.bf16.msra.mxu1 %v1157_v56 }
  0xa7   : > { %1128 = vmatpush1.bf16.msra.mxu0 %v1127_v4  ;;  %1162 = vmatprep.subr.bf16.mxu1 %v1161_v59  ;;  %v1173_v4 = vpack.c.bf16 %v569_v3, %v568_v2 }
  0xa8   : > { %1130 = vmatprep.subr.bf16.mxu0 %v1129_v5  ;;  %v570_v5 = vld [vmem:[#allocation6 + $0x70] sm:$0xff] }
  0xa9   : > { %v1177_v7 = vpack.c.bf16 %v571_v6, %v570_v5 }
  0xaa   : > { %1164 = vmatpush3.bf16.msra.mxu1 %v1161_v59 }
  0xab   : > { %1132 = vmatpush1.bf16.msra.mxu0 %v1131_v10  ;;  %1166 = vmatprep.subr.bf16.mxu1 %v1165_v62  ;;  %v375_v10 = vsub.s32 1, %v370_v9 }
  0xac   : > { %1134 = vmatprep.subr.bf16.mxu0 %v1133_v11  ;;  %v367_v11 = vld [vmem:[%s1872_s2] sm:$0x3] }
  0xad   : > { %v376_v12 = vrot.slane %v367_v11, %v375_v10 }
  0xae   : > { %1168 = vmatpush3.bf16.msra.mxu1 %v1165_v62 }
  0xaf   : > { %1136 = vmatpush1.bf16.msra.mxu0 %v1135_v16  ;;  %1170 = vmatprep.subr.bf16.mxu1 %v1169_v1 }
  0xb0   : > { %1138 = vmatprep.subr.bf16.mxu0 %v1137_v17 }
  0xb2   : > { %1172 = vmatpush3.bf16.msra.mxu1 %v1169_v1 }
  0xb3   : > { %1140 = vmatpush1.bf16.msra.mxu0 %v1139_v22  ;;  %1174 = vmatprep.subr.bf16.mxu1 %v1173_v4 }
  0xb4   : > { %1142 = vmatprep.subr.bf16.mxu0 %v1141_v23  ;;  %v1774_v23 = vrot.slane %v367_v11, %v371_v18 }
  0xb6   : > { %1176 = vmatpush3.bf16.msra.mxu1 %v1173_v4 }
  0xb7   : > { %1144 = vmatpush1.bf16.msra.mxu0 %v1143_v28  ;;  %1178 = vmatprep.subr.bf16.mxu1 %v1177_v7 }
  0xb8   : > { %1146 = vmatprep.subr.bf16.mxu0 %v1145_v29 }
  0xba   : > { %1180 = vmatpush3.bf16.msra.mxu1 %v1177_v7 }
  0xbb   : > { %1148 = vmatpush1.bf16.msra.mxu0 %v1147_v32 }
  0xbe   : > { %444 = vmatmul.mubr.f32.vlgmr.msra.gmra.mrb[0].mxu0 %v287_v33 }
  0xbf   : > { %449 = vmatprep.mubr.f32.mxu0 %v290_v34 }
  0xc2   : > { %450 = vmatmul.mubr.f32.gmra.mrb[2].mxu0 %v289_v35 }
  0xc3   : > { %455 = vmatprep.mubr.f32.mxu0 %v292_v36 }
  0xc6   : > { %456 = vmatmul.mubr.f32.gmra.mrb[4].mxu0 %v291_v37 }
  0xc7   : > { %461 = vmatprep.mubr.f32.mxu0 %v294_v38 }
  0xca   : > { %462 = vmatmul.mubr.f32.gmra.mrb[6].mxu0 %v293_v39 }
  0xcb   : > { %467 = vmatprep.mubr.f32.mxu0 %v296_v40 }
  0xce   : > { %468 = vmatmul.mubr.f32.gmra.mrb[8].mxu0 %v295_v41 }
  0xcf   : > { %473 = vmatprep.mubr.f32.mxu0 %v298_v42 }
  0xd2   : > { %474 = vmatmul.mubr.f32.gmra.mrb[10].mxu0 %v297_v43 }
  0xd3   : > { %479 = vmatprep.mubr.f32.mxu0 %v300_v44 }
  0xd6   : > { %480 = vmatmul.mubr.f32.gmra.mrb[12].mxu0 %v299_v45 }
  0xd7   : > { %485 = vmatprep.mubr.f32.mxu0 %v302_v46 }
  0xda   : > { %486 = vmatmul.mubr.f32.gmra.mrb[14].mxu0 %v301_v47 }
 0x191   : > { %v445_v13 = vpop.f32.mrb[0].mxu0 }
 0x192   : > { %v447_v14 = vpop.f32.mrb[1].mxu0  ;;  %v446_v28 = vadd.f32 %v445_v13, %v1774_v23 }
 0x193   : > { %v448_v15 = vadd.f32 %v447_v14, %v376_v12 }
 0x195   : > { %v985_v16 = vmul.f32 -1.442695, %v448_v15  ;;  %v451_v17 = vpop.f32.mrb[2].mxu0 }
 0x196   : > { %v453_v19 = vpop.f32.mrb[3].mxu0  ;;  %v452_v35 = vadd.f32 %v451_v17, %v1774_v23 }
 0x197   : > { %1305 = vpow2.f32 %v985_v16  ;;  %v454_v20 = vadd.f32 %v453_v19, %v376_v12 }
 0x199   : > { %v986_v21 = vmul.f32 -1.442695, %v454_v20  ;;  %v457_v22 = vpop.f32.mrb[4].mxu0 }
 0x19a   : > { %v459_v24 = vpop.f32.mrb[5].mxu0  ;;  %v458_v42 = vadd.f32 %v457_v22, %v1774_v23 }
 0x19b   : > { %1307 = vpow2.f32 %v986_v21  ;;  %v460_v25 = vadd.f32 %v459_v24, %v376_v12 }
 0x19d   : > { %v987_v26 = vmul.f32 -1.442695, %v460_v25  ;;  %v463_v27 = vpop.f32.mrb[6].mxu0 }
 0x19e   : > { %v465_v29 = vpop.f32.mrb[7].mxu0  ;;  %v464_v49 = vadd.f32 %v463_v27, %v1774_v23 }
 0x19f   : > { %1309 = vpow2.f32 %v987_v26  ;;  %v466_v30 = vadd.f32 %v465_v29, %v376_v12 }
 0x1a0   : > { %1311 = vtanh.f32 %v446_v28 }
 0x1a1   : > { %v1306_v31 = vpop.eup %1305  ;;  %v988_v32 = vmul.f32 -1.442695, %v466_v30  ;;  %v469_v33 = vpop.f32.mrb[8].mxu0 }
 0x1a2   : > { %v524_v34 = vadd.f32 1.0, %v1306_v31  ;;  %v471_v36 = vpop.f32.mrb[9].mxu0  ;;  %v470_v58 = vadd.f32 %v469_v33, %v1774_v23  ;;  %v993_v31 = vld [vmem:[%s1874_s4] ss:$0 sm:$0xff] }
 0x1a3   : > { %1313 = vpow2.f32 %v988_v32  ;;  %v472_v37 = vadd.f32 %v471_v36, %v376_v12 }
 0x1a4   : > { %1315 = vrcp.f32 %v524_v34 }
 0x1a5   : > { %v1308_v38 = vpop.eup %1307  ;;  %v989_v39 = vmul.f32 -1.442695, %v472_v37  ;;  %v475_v40 = vpop.f32.mrb[10].mxu0  ;;  %1317 = vtanh.f32 %v452_v35 }
 0x1a6   : > { %v525_v41 = vadd.f32 1.0, %v1308_v38  ;;  %v477_v43 = vpop.f32.mrb[11].mxu0  ;;  %v476_v3 = vadd.f32 %v475_v40, %v1774_v23 }
 0x1a7   : > { %1319 = vpow2.f32 %v989_v39  ;;  %v478_v44 = vadd.f32 %v477_v43, %v376_v12 }
 0x1a8   : > { %1321 = vrcp.f32 %v525_v41 }
 0x1a9   : > { %v1310_v45 = vpop.eup %1309  ;;  %v990_v46 = vmul.f32 -1.442695, %v478_v44  ;;  %v481_v47 = vpop.f32.mrb[12].mxu0  ;;  %1323 = vtanh.f32 %v458_v42 }
 0x1aa   : > { %v526_v48 = vadd.f32 1.0, %v1310_v45  ;;  %v483_v50 = vpop.f32.mrb[13].mxu0  ;;  %v1312_v52 = vpop.eup %1311  ;;  %v482_v9 = vadd.f32 %v481_v47, %v1774_v23 }
 0x1ab   : > { %1325 = vpow2.f32 %v990_v46  ;;  %v484_v51 = vadd.f32 %v483_v50, %v376_v12 }
 0x1ac   : > { %1327 = vrcp.f32 %v526_v48 }
 0x1ad   : > { %v1314_v53 = vpop.eup %1313  ;;  %v991_v54 = vmul.f32 -1.442695, %v484_v51  ;;  %v487_v55 = vpop.f32.mrb[14].mxu0  ;;  %1329 = vtanh.f32 %v464_v49 }
 0x1ae   : > { %v1316_v56 = vpop.eup %1315  ;;  %v527_v57 = vadd.f32 1.0, %v1314_v53  ;;  %v489_v59 = vpop.f32.mrb[15].mxu0  ;;  %v488_v15 = vadd.f32 %v487_v55, %v1774_v23 }
 0x1af   : > { %1331 = vpow2.f32 %v991_v54  ;;  %v490_v60 = vadd.f32 %v489_v59, %v376_v12  ;;  %v548_v61 = vmul.f32 %v1316_v56, %v1312_v52  ;;  %v1318_v62 = vpop.eup %1317 }
 0x1b0   : > { %1333 = vrcp.f32 %v527_v57 }
 0x1b1   : > { %v1320_v63 = vpop.eup %1319  ;;  %v992_v0 = vmul.f32 -1.442695, %v490_v60  ;;  %1073 = vmatprep.mubr.f32.mxu1 %v548_v61  ;;  %1335 = vtanh.f32 %v470_v58 }
 0x1b2   : > { %v1322_v1 = vpop.eup %1321  ;;  %v528_v2 = vadd.f32 1.0, %v1320_v63 }
 0x1b3   : > { %1337 = vpow2.f32 %v992_v0  ;;  %v549_v4 = vmul.f32 %v1322_v1, %v1318_v62  ;;  %v1324_v5 = vpop.eup %1323 }
 0x1b4   : > { %1339 = vrcp.f32 %v528_v2 }
 0x1b5   : > { %v1326_v6 = vpop.eup %1325  ;;  %1074 = vmatmul.mubr.f32.vlgmr.msra.gmra.mrb[0].mxu1 %v549_v4  ;;  %1341 = vtanh.f32 %v476_v3 }
 0x1b6   : > { %v1328_v7 = vpop.eup %1327  ;;  %v529_v8 = vadd.f32 1.0, %v1326_v6 }
 0x1b7   : > { %v550_v10 = vmul.f32 %v1328_v7, %v1324_v5  ;;  %v1330_v11 = vpop.eup %1329 }
 0x1b8   : > { %1343 = vrcp.f32 %v529_v8 }
 0x1b9   : > { %v1332_v12 = vpop.eup %1331  ;;  %1076 = vmatprep.mubr.f32.mxu1 %v550_v10  ;;  %1345 = vtanh.f32 %v482_v9 }
 0x1ba   : > { %v1334_v13 = vpop.eup %1333  ;;  %v530_v14 = vadd.f32 1.0, %v1332_v12 }
 0x1bb   : > { %v551_v16 = vmul.f32 %v1334_v13, %v1330_v11  ;;  %v1336_v17 = vpop.eup %1335 }
 0x1bc   : > { %1347 = vrcp.f32 %v530_v14 }
 0x1bd   : > { %v1338_v18 = vpop.eup %1337  ;;  %1077 = vmatmul.mubr.f32.gmra.mrb[2].mxu1 %v551_v16  ;;  %1349 = vtanh.f32 %v488_v15 }
 0x1be   : > { %v1340_v19 = vpop.eup %1339  ;;  %v531_v20 = vadd.f32 1.0, %v1338_v18 }
 0x1bf   : > { %v552_v21 = vmul.f32 %v1340_v19, %v1336_v17  ;;  %v1342_v22 = vpop.eup %1341 }
 0x1c0   : > { %1351 = vrcp.f32 %v531_v20 }
 0x1c1   : > { %1079 = vmatprep.mubr.f32.mxu1 %v552_v21 }
 0x1c2   : > { %v1344_v24 = vpop.eup %1343 }
 0x1c3   : > { %v553_v25 = vmul.f32 %v1344_v24, %v1342_v22  ;;  %v1346_v26 = vpop.eup %1345 }
 0x1c5   : > { %1080 = vmatmul.mubr.f32.gmra.mrb[4].mxu1 %v553_v25 }
 0x1c6   : > { %v1348_v27 = vpop.eup %1347 }
 0x1c7   : > { %v554_v28 = vmul.f32 %v1348_v27, %v1346_v26  ;;  %v1350_v23 = vpop.eup %1349 }
 0x1c9   : > { %1082 = vmatprep.mubr.f32.mxu1 %v554_v28 }
 0x1ca   : > { %v1352_v29 = vpop.eup %1351 }
 0x1cb   : > { %v555_v30 = vmul.f32 %v1352_v29, %v1350_v23 }
 0x1cd   : > { %1083 = vmatmul.mubr.f32.gmra.mrb[6].mxu1 %v555_v30 }
 0x288   : > { %v1075_v32 = vpop.f32.mrb[0].mxu1 }
 0x289   : > { %v651_v33 = vadd.f32 %v1075_v32, %v993_v31  ;;  %v645_v34 = vpop.f32.mrb[1].mxu1 }
 0x28a   : > { %v646_v35 = vadd.f32 %v993_v31, %v645_v34 }
 0x28b   : > { %686 = vst.msk [vmem:[%s1788_s18 + $0x8] sm:$0xff] %vm684_vm0, %v651_v33 }
 0x28c   : > { %685 = vst.msk [vmem:[%s1788_s18] sm:$0xff] %vm684_vm0, %v646_v35 }
 0x290   : > { %v1078_v36 = vpop.f32.mrb[2].mxu1 }
 0x291   : > { %v661_v37 = vadd.f32 %v1078_v36, %v993_v31  ;;  %v655_v38 = vpop.f32.mrb[3].mxu1 }
 0x292   : > { %v656_v39 = vadd.f32 %v993_v31, %v655_v38 }
 0x293   : > { %688 = vst.msk [vmem:[%s1788_s18 + $0x18] sm:$0xff] %vm684_vm0, %v661_v37 }
 0x294   : > { %687 = vst.msk [vmem:[%s1788_s18 + $0x10] sm:$0xff] %vm684_vm0, %v656_v39 }
 0x298   : > { %v1081_v40 = vpop.f32.mrb[4].mxu1 }
 0x299   : > { %v671_v41 = vadd.f32 %v1081_v40, %v993_v31  ;;  %v665_v42 = vpop.f32.mrb[5].mxu1 }
 0x29a   : > { %v666_v43 = vadd.f32 %v993_v31, %v665_v42 }
 0x29b   : > { %690 = vst.msk [vmem:[%s1788_s18 + $0x28] sm:$0xff] %vm684_vm0, %v671_v41 }
 0x29c   : > { %689 = vst.msk [vmem:[%s1788_s18 + $0x20] sm:$0xff] %vm684_vm0, %v666_v43 }
 0x29e   : > { %699 = sbr.rel (!%p1889_p6) target bundleno = 726 (0x2d6), region = 56 }
 0x2a0   : > { %v1084_v44 = vpop.f32.mrb[6].mxu1 }
 0x2a1   : > { %v681_v45 = vadd.f32 %v1084_v44, %v993_v31  ;;  %v675_v46 = vpop.f32.mrb[7].mxu1 }
 0x2a2   : > { %v676_v47 = vadd.f32 %v993_v31, %v675_v46 }
 0x2a3   : > { %692 = vst.msk [vmem:[%s1788_s18 + $0x38] sm:$0xff] %vm684_vm0, %v681_v45 }
 0x2a4   : > { %691 = vst.msk [vmem:[%s1788_s18 + $0x30] sm:$0xff] %vm684_vm0, %v676_v47 }
 0x2a5   : > { %s1900_s11 = smov (!%p702_p7, %s701_s11), 8 }
 0x2a6   : > { %s996_s10 = sshll.u32 %s1900_s11, 7 }
 0x2a7   : > { %p999_p9 = scmp.eq.s32.totalorder %s996_s10, 0 }
 0x2a8   : > { %s1819_s29 = sshrl.u32 (!%p999_p9), %s1900_s11, 3 }
 0x2a9   : > { %710 = sbr.rel (%p999_p9) target bundleno = 726 (0x2d6), region = 60  ;;  %p1000_p12 = scmp.le.s32.totalorder (!%p999_p9), %s1819_s29, 0 }
 0x2b0   : > { %901 = sbr.rel (%p1000_p12) target bundleno = 705 (0x2c1), region = 142  ;;  %s1890_s22 = smov (!%p1000_p12), %s1813_s8 }
 0x2b1   : > { %s1891_s27 = smov (!%p1000_p12), %s1788_s18  ;;  %s1828_s16 = smov (!%p1000_p12), 0  }
 0x2b2   : > { %s1830_s17 = smov (!%p1000_p12), 0  }
 0x2b7 LB: >> { %v786_v48 = vld [vmem:[%s1515_s27] sm:$0xff]  ;;  %v788_v49 = vld [vmem:[%s1515_s27 + $0x8] sm:$0xff]  ;;  %v790_v50 = vld [vmem:[%s1515_s27 + $0x10] sm:$0xff]  ;;  %s802_s24 = sadd.s32 1, %s1519_s16  ;;  %s780_s17 = sadd.s32 1, %s1523_s17   ;;  %s1523_s17 = sphi %s1830_s17, %s780_s17   ;;  %s1519_s16 = sphi %s1828_s16, %s1892_s16   ;;  %s1515_s27 = sphi %s1891_s27, %s807_s27   ;;  %s1511_s22 = sphi %s1890_s22, %s808_s22  }
 0x2b8   : >> { %787 = vst [vmem:[%s1511_s22] sm:$0xff] %v786_v48  ;;  %789 = vst [vmem:[%s1511_s22 + $0x8] sm:$0xff] %v788_v49  ;;  %v792_v51 = vld [vmem:[%s1515_s27 + $0x18] sm:$0xff]  ;;  %v794_v52 = vld [vmem:[%s1515_s27 + $0x20] sm:$0xff]  ;;  %p803_p0 = scmp.ge.s32.totalorder %s802_s24, %s1819_s29  ;;  %p779_p1 = scmp.ge.s32.totalorder %s780_s17, %s1819_s29 }
 0x2b9   : >> { %791 = vst [vmem:[%s1511_s22 + $0x10] sm:$0xff] %v790_v50  ;;  %v796_v53 = vld [vmem:[%s1515_s27 + $0x28] sm:$0xff]  ;;  %793 = vst [vmem:[%s1511_s22 + $0x18] sm:$0xff] %v792_v51  ;;  %v798_v54 = vld [vmem:[%s1515_s27 + $0x30] sm:$0xff] }
 0x2ba   : >> { %795 = vst [vmem:[%s1511_s22 + $0x20] sm:$0xff] %v794_v52  ;;  %797 = vst [vmem:[%s1511_s22 + $0x28] sm:$0xff] %v796_v53  ;;  %v800_v55 = vld [vmem:[%s1515_s27 + $0x38] sm:$0xff]  ;;  %s1902_s24 = smov (%p803_p0, %s802_s24), 0  ;;  %782 = sbr.rel (!%p779_p1) target bundleno = 695 (0x2b7), region = 148 }
 0x2bb   : >> { %799 = vst [vmem:[%s1511_s22 + $0x30] sm:$0xff] %v798_v54  ;;  %801 = vst [vmem:[%s1511_s22 + $0x38] sm:$0xff] %v800_v55  ;;  %s1001_s25 = sshll.u32 %s1902_s24, 6  ;;  %s1892_s16 = smov %s1902_s24 }
 0x2bc   : >> { %s807_s27 = scalar_lea.vmem %s1788_s18, %s1001_s25 [#allocation7]   ;;  %s808_s22 = scalar_lea.vmem %s1813_s8, %s1001_s25  }
 0x2c1 PF: > { %s1849_s6 = sand.u32 7, %s1900_s11   ;;  %s1015_s28 = sshll.u32 %s1819_s29, 6 }
 0x2c2   : > { %s813_s30 = scalar_lea.vmem %s1788_s18, %s1015_s28 [#allocation7]   ;;  %s815_s14 = scalar_lea.vmem %s1813_s8, %s1015_s28  }
 0x2c3   : > { %p1006_p4 = scmp.le.s32.totalorder %s1849_s6, 0 }
 0x2c4   : > { %s1525_s15 = smov (!%p1006_p4), %s815_s14   ;;  %s1529_s7 = smov (!%p1006_p4), %s813_s30  }
 0x2c5   : > { %915 = sbr.rel (%p1006_p4) target bundleno = 726 (0x2d6), region = 153  ;;  %s1533_s21 = smov (!%p1006_p4), 0  }
 0x2c6   : > { %s1537_s9 = smov (!%p1006_p4), 0  }
 0x2cc LB: >> { %v825_v56 = vld [vmem:[%s1531_s7] sm:$0xff]  ;;  %s827_s11 = sadd.s32 1, %s1535_s21  ;;  %s819_s9 = sadd.s32 1, %s1539_s9   ;;  %s1539_s9 = sphi %s1537_s9, %s819_s9   ;;  %s1535_s21 = sphi %s1533_s21, %s1534_s21   ;;  %s1531_s7 = sphi %s1529_s7, %s832_s7   ;;  %s1527_s15 = sphi %s1525_s15, %s833_s15  }
 0x2cd   : >> { %826 = vst [vmem:[%s1527_s15] sm:$0xff] %v825_v56  ;;  %p828_p5 = scmp.ge.s32.totalorder %s827_s11, %s1849_s6  ;;  %p818_p8 = scmp.ge.s32.totalorder %s819_s9, %s1849_s6 }
 0x2cf   : >> { %s1904_s11 = smov (%p828_p5, %s827_s11), 0  ;;  %821 = sbr.rel (!%p818_p8) target bundleno = 716 (0x2cc), region = 159 }
 0x2d0   : >> { %s1007_s18 = sshll.u32 %s1904_s11, 3  ;;  %s1534_s21 = smov %s1904_s11  }
 0x2d1   : >> { %s832_s7 = scalar_lea.vmem %s813_s30, %s1007_s18 [#allocation7]   ;;  %s833_s15 = scalar_lea.vmem %s815_s14, %s1007_s18  }
 0x2d6 PF: > { %p16_p11 = scmp.ge.s32.totalorder %s1602_s23, 6   ;;  %s1893_s18 = smov %s1499_s19 }
 0x2d7   : > { %s1894_s19 = smov %s1503_s20  ;;  %s1895_s20 = smov %s1612_s26 }
 0x2d8   : > { %s1896_s21 = smov %s1602_s23  ;;  %18 = sbr.rel (!%p16_p11) target bundleno = 4 (0x4), region = 170 }
 0x2df   :  { %849 = vsyncpa [#allocation3], 1 }
 0x2e0   :  { %851 = vsyncpa [#allocation3 + $0x1], 1 }
 0x2e1   :  { %852 = vsyncpa [#allocation5], 1 }

</bundles_post_ra>
